<compile_context>
chip_gen: v6e
topology: v6e:2x2x1
jax: 0.10.0
libtpu: 0.0.40
codegen_flags: <defaults>
</compile_context>

<pallas_src>
import jax
import jax.numpy as jnp
from jax.experimental import pallas as pl
from jax.experimental.pallas import tpu as pltpu


def _round_up(n, m):
    return ((n + m - 1) // m) * m


def _mlp2emb_kernel(x_ref, w1_ref, b_ref, a_ref, w2_ref, c_ref, out_ref):
    # First fused Linear (BN scale pre-folded into w1): (tb, L) @ (L, 2M).
    h = jnp.dot(x_ref[...], w1_ref[...], preferred_element_type=jnp.float32)
    h = h + b_ref[...]                              # folded BN bias (f32)
    h = jnp.where(h >= 0.0, h, a_ref[...] * h)      # PReLU, per-branch alpha
    # Dropout: identity in eval mode.
    # Second fused Linear: block-diagonal (2M, 2E) weight + concatenated bias.
    out = jnp.dot(h.astype(w2_ref.dtype), w2_ref[...],
                  preferred_element_type=jnp.float32)
    out_ref[...] = out + c_ref[...]


def pack_params(params, compute_dtype=jnp.bfloat16):
    """Fold BN scale into w1, fuse the two branches, cast matmul operands."""
    mlp_layer = params["w1a"].shape[1]
    emb_dim = params["w2a"].shape[1]

    w1 = jnp.concatenate([params["w1a"] * params["sa"],
                          params["w1b"] * params["sb"]], axis=1)
    b = jnp.concatenate([params["ba"], params["bb"]], axis=1)
    alpha = jnp.concatenate(
        [jnp.broadcast_to(params["aa"], (1, mlp_layer)),
         jnp.broadcast_to(params["ab"], (1, mlp_layer))], axis=1)

    w2 = jnp.zeros((2 * mlp_layer, 2 * emb_dim), jnp.float32)
    w2 = w2.at[:mlp_layer, :emb_dim].set(params["w2a"])
    w2 = w2.at[mlp_layer:, emb_dim:].set(params["w2b"])
    c = jnp.concatenate([params["ca"], params["cb"]], axis=1)

    return dict(
        w1=w1.astype(compute_dtype),
        b=b.astype(jnp.float32),
        alpha=alpha.astype(jnp.float32),
        w2=w2.astype(compute_dtype),
        c=c.astype(jnp.float32),
        emb_dim=emb_dim,
        compute_dtype=compute_dtype,
    )


def mlp2emb_forward(x_emb, packed, *, tb=256):
    B = x_emb.shape[0]
    input_len = packed["w1"].shape[0]
    two_mlp = packed["w1"].shape[1]
    two_emb = packed["w2"].shape[1]
    emb_dim = packed["emb_dim"]
    cdtype = packed["compute_dtype"]

    x = x_emb.reshape(B, input_len).astype(cdtype)

    # Batch tile: multiple of 8 (sublane), clamped to the (rounded) batch.
    tb = max(8, _round_up(min(tb, _round_up(B, 8)), 8))
    Bp = _round_up(B, tb)
    if Bp != B:
        x = jnp.pad(x, ((0, Bp - B), (0, 0)))
    grid = (Bp // tb,)

    def resident(shape):
        # Grid-invariant operand: constant block index -> fetched once.
        return pl.BlockSpec(shape, lambda i: (0, 0))

    in_specs = [
        pl.BlockSpec((tb, input_len), lambda i: (i, 0)),   # x (streamed)
        resident((input_len, two_mlp)),                    # fused w1 (BN-folded)
        resident((1, two_mlp)),                            # fused BN bias
        resident((1, two_mlp)),                            # fused PReLU alphas
        resident((two_mlp, two_emb)),                      # block-diagonal w2
        resident((1, two_emb)),                            # fused output bias
    ]
    out_specs = pl.BlockSpec((tb, two_emb), lambda i: (i, 0))
    out_shape = jax.ShapeDtypeStruct((Bp, two_emb), jnp.float32)

    # VMEM budget from actual tile sizes (2x headroom), capped at 32 MiB so it
    # is valid on v7x (64 MiB physical) as well as v5e/v6e.
    csize = jnp.dtype(cdtype).itemsize
    est = (2 * tb * input_len * csize                       # x, double-buffered
           + 2 * tb * two_emb * 4                           # out, double-buffered
           + 2 * tb * two_mlp * 4                           # h intermediate
           + 2 * (input_len * two_mlp + two_mlp * two_emb) * csize
           + 2 * 3 * two_mlp * 4)
    vmem_limit = int(min(32 << 20, max(8 << 20, 2 * est)))

    out = pl.pallas_call(
        _mlp2emb_kernel,
        grid_spec=pltpu.PrefetchScalarGridSpec(
            num_scalar_prefetch=0,
            grid=grid,
            in_specs=in_specs,
            out_specs=out_specs),
        out_shape=out_shape,
        compiler_params=pltpu.CompilerParams(
            dimension_semantics=("parallel",),
            vmem_limit_bytes=vmem_limit),
    )(x, packed["w1"], packed["b"], packed["alpha"], packed["w2"], packed["c"])

    dnn = out[:B, :emb_dim]
    cross = out[:B, emb_dim:]
    # .unsqueeze(1) in the PyTorch forward
    return dnn[:, None, :], cross[:, None, :]


def init_params(key, field_num, emb_dim, mlp_layer=256):
    input_len = field_num * emb_dim
    ks = jax.random.split(key, 6)

    def xavier(k, fan_in, fan_out):
        bound = (6.0 / (fan_in + fan_out)) ** 0.5
        return jax.random.uniform(k, (fan_in, fan_out), jnp.float32,
                                  -bound, bound)

    # Freshly-initialized BatchNorm1d (eval): gamma=1, beta=0, rm=0, rv=1.
    eps = 1e-5
    gamma = jnp.ones((1, mlp_layer), jnp.float32)
    beta = jnp.zeros((1, mlp_layer), jnp.float32)
    rmean = jnp.zeros((1, mlp_layer), jnp.float32)
    rvar = jnp.ones((1, mlp_layer), jnp.float32)
    scale = gamma / jnp.sqrt(rvar + eps)
    bias = beta - rmean * scale
    alpha = jnp.full((1, 1), 0.25, jnp.float32)  # PReLU default init

    bbound = 1.0 / (mlp_layer ** 0.5)
    return dict(
        w1a=xavier(ks[0], input_len, mlp_layer), sa=scale, ba=bias, aa=alpha,
        w2a=xavier(ks[1], mlp_layer, emb_dim),
        ca=jax.random.uniform(ks[2], (1, emb_dim), jnp.float32, -bbound, bbound),
        w1b=xavier(ks[3], input_len, mlp_layer), sb=scale, bb=bias, ab=alpha,
        w2b=xavier(ks[4], mlp_layer, emb_dim),
        cb=jax.random.uniform(ks[5], (1, emb_dim), jnp.float32, -bbound, bbound),
    )


def _reference_f32(x_emb, params):
    """Pure-f32 PyTorch-equivalent eval-mode math."""
    B = x_emb.shape[0]
    x = x_emb.reshape(B, -1)

    def branch(w1, s, b, alpha, w2, c):
        h = x @ w1
        h = h * s + b
        h = jnp.where(h >= 0.0, h, alpha * h)
        return h @ w2 + c

    dnn = branch(params["w1a"], params["sa"], params["ba"],
                 params["aa"], params["w2a"], params["ca"])
    cross = branch(params["w1b"], params["sb"], params["bb"],
                   params["ab"], params["w2b"], params["cb"])
    return dnn[:, None, :], cross[:, None, :]


def _reference_packed(x_emb, packed):
    """Pure-JAX emulation of the kernel's exact precision choices."""
    B = x_emb.shape[0]
    emb_dim = packed["emb_dim"]
    x = x_emb.reshape(B, -1).astype(packed["compute_dtype"])
    h = jnp.dot(x, packed["w1"], preferred_element_type=jnp.float32)
    h = h + packed["b"]
    h = jnp.where(h >= 0.0, h, packed["alpha"] * h)
    out = jnp.dot(h.astype(packed["compute_dtype"]), packed["w2"],
                  preferred_element_type=jnp.float32) + packed["c"]
    return out[:, None, :emb_dim], out[:, None, emb_dim:]


if __name__ == "__main__":
    B, field_num, emb_dim, mlp_layer = 16, 4, 16, 256

    key = jax.random.PRNGKey(0)
    k_x, k_p = jax.random.split(key)
    x_emb = jax.random.normal(k_x, (B, field_num, emb_dim), jnp.float32)
    params = init_params(k_p, field_num, emb_dim, mlp_layer)
    packed = pack_params(params)

    dnn_emb, cross_emb = mlp2emb_forward(x_emb, packed)
    jax.block_until_ready((dnn_emb, cross_emb))

    assert dnn_emb.shape == (B, 1, emb_dim)
    assert cross_emb.shape == (B, 1, emb_dim)

    # Tight check against a pure-JAX emulation of the kernel's precision.
    ref_dnn_p, ref_cross_p = _reference_packed(x_emb, packed)
    assert jnp.allclose(dnn_emb, ref_dnn_p, atol=5e-3, rtol=5e-3)
    assert jnp.allclose(cross_emb, ref_cross_p, atol=5e-3, rtol=5e-3)

    # Looser check against the full-f32 reference (bf16 matmul operands,
    # f32 accumulation -> ~1% level differences expected).
    ref_dnn, ref_cross = _reference_f32(x_emb, params)
    assert jnp.allclose(dnn_emb, ref_dnn, atol=5e-2, rtol=5e-2)
    assert jnp.allclose(cross_emb, ref_cross, atol=5e-2, rtol=5e-2)

    print("KERNEL_OK")
</pallas_src>

<mosaic_0001>
module attributes {stable_mosaic.version = 11 : i64} {
  func.func @_mlp2emb_kernel(%arg0: i32, %arg1: memref<16x64xbf16, #tpu.memory_space<vmem>>, %arg2: memref<64x512xbf16, #tpu.memory_space<vmem>>, %arg3: memref<1x512xf32, #tpu.memory_space<vmem>>, %arg4: memref<1x512xf32, #tpu.memory_space<vmem>>, %arg5: memref<512x32xbf16, #tpu.memory_space<vmem>>, %arg6: memref<1x32xf32, #tpu.memory_space<vmem>>, %arg7: memref<16x32xf32, #tpu.memory_space<vmem>>) attributes {dimension_semantics = [#tpu.dimension_semantics<parallel>], iteration_bounds = array<i64: 1>, scalar_prefetch = 0 : i64, scratch_operands = 0 : i64, tpu.core_type = #tpu.core_type<tc>, window_params = [{transform_indices = @transform_0, window_bounds = array<i64: 16, 64>}, {pipeline_mode = #tpu.pipeline_mode<synchronous>, transform_indices = @transform_1, window_bounds = array<i64: 64, 512>}, {pipeline_mode = #tpu.pipeline_mode<synchronous>, transform_indices = @transform_2, window_bounds = array<i64: 1, 512>}, {pipeline_mode = #tpu.pipeline_mode<synchronous>, transform_indices = @transform_3, window_bounds = array<i64: 1, 512>}, {pipeline_mode = #tpu.pipeline_mode<synchronous>, transform_indices = @transform_4, window_bounds = array<i64: 512, 32>}, {pipeline_mode = #tpu.pipeline_mode<synchronous>, transform_indices = @transform_5, window_bounds = array<i64: 1, 32>}, {transform_indices = @transform_6, window_bounds = array<i64: 16, 32>}]} {
    %c0 = arith.constant 0 : index
    %c0_0 = arith.constant 0 : index
    %0 = vector.load %arg1[%c0, %c0_0] : memref<16x64xbf16, #tpu.memory_space<vmem>>, vector<16x64xbf16>
    %c0_1 = arith.constant 0 : index
    %c0_2 = arith.constant 0 : index
    %1 = vector.load %arg2[%c0_1, %c0_2] : memref<64x512xbf16, #tpu.memory_space<vmem>>, vector<64x512xbf16>
    %cst = arith.constant dense<0.000000e+00> : vector<16x512xf32>
    %2 = tpu.matmul %0, %1, %cst {dimension_numbers = #tpu.dot_dimension_numbers<[1], [0], [0], [1], [0, 0, 1, 1], [], []>} : vector<16x64xbf16>, vector<64x512xbf16>, vector<16x512xf32> -> vector<16x512xf32>
    %c0_3 = arith.constant 0 : index
    %c0_4 = arith.constant 0 : index
    %3 = vector.load %arg3[%c0_3, %c0_4] : memref<1x512xf32, #tpu.memory_space<vmem>>, vector<1x512xf32>
    %4 = vector.broadcast %3 : vector<1x512xf32> to vector<16x512xf32>
    %5 = arith.addf %2, %4 : vector<16x512xf32>
    %cst_5 = arith.constant 0.000000e+00 : f32
    %6 = vector.broadcast %cst_5 : f32 to vector<16x512xf32>
    %7 = arith.cmpf oge, %5, %6 : vector<16x512xf32>
    %c0_6 = arith.constant 0 : index
    %c0_7 = arith.constant 0 : index
    %8 = vector.load %arg4[%c0_6, %c0_7] : memref<1x512xf32, #tpu.memory_space<vmem>>, vector<1x512xf32>
    %9 = vector.broadcast %8 : vector<1x512xf32> to vector<16x512xf32>
    %10 = arith.mulf %9, %5 : vector<16x512xf32>
    %11 = arith.select %7, %5, %10 : vector<16x512xi1>, vector<16x512xf32>
    %12 = arith.truncf %11 : vector<16x512xf32> to vector<16x512xbf16>
    %c0_8 = arith.constant 0 : index
    %c0_9 = arith.constant 0 : index
    %13 = vector.load %arg5[%c0_8, %c0_9] : memref<512x32xbf16, #tpu.memory_space<vmem>>, vector<512x32xbf16>
    %cst_10 = arith.constant dense<0.000000e+00> : vector<16x32xf32>
    %14 = tpu.matmul %12, %13, %cst_10 {dimension_numbers = #tpu.dot_dimension_numbers<[1], [0], [0], [1], [0, 0, 1, 1], [], []>} : vector<16x512xbf16>, vector<512x32xbf16>, vector<16x32xf32> -> vector<16x32xf32>
    %c0_11 = arith.constant 0 : index
    %c0_12 = arith.constant 0 : index
    %15 = vector.load %arg6[%c0_11, %c0_12] : memref<1x32xf32, #tpu.memory_space<vmem>>, vector<1x32xf32>
    %16 = vector.broadcast %15 : vector<1x32xf32> to vector<16x32xf32>
    %17 = arith.addf %14, %16 : vector<16x32xf32>
    %c0_13 = arith.constant 0 : index
    %c0_14 = arith.constant 0 : index
    %18 = vector.load %arg7[%c0_13, %c0_14] : memref<16x32xf32, #tpu.memory_space<vmem>>, vector<16x32xf32>
    tpu.vector_store %arg7[%c0_13, %c0_14], %17 {strides = array<i32>} : memref<16x32xf32, #tpu.memory_space<vmem>>, vector<16x32xf32>,
    return
  }
  func.func @transform_0(%arg0: i32) -> (i32, i32) {
    %c0_i32 = arith.constant 0 : i32
    %c0_i32_0 = arith.constant 0 : i32
    return %arg0, %c0_i32 : i32, i32
  }
  func.func @transform_1(%arg0: i32) -> (i32, i32) {
    %c0_i32 = arith.constant 0 : i32
    %c0_i32_0 = arith.constant 0 : i32
    %c0_i32_1 = arith.constant 0 : i32
    return %c0_i32, %c0_i32_0 : i32, i32
  }
  func.func @transform_2(%arg0: i32) -> (i32, i32) {
    %c0_i32 = arith.constant 0 : i32
    %c0_i32_0 = arith.constant 0 : i32
    %c0_i32_1 = arith.constant 0 : i32
    return %c0_i32, %c0_i32_0 : i32, i32
  }
  func.func @transform_3(%arg0: i32) -> (i32, i32) {
    %c0_i32 = arith.constant 0 : i32
    %c0_i32_0 = arith.constant 0 : i32
    %c0_i32_1 = arith.constant 0 : i32
    return %c0_i32, %c0_i32_0 : i32, i32
  }
  func.func @transform_4(%arg0: i32) -> (i32, i32) {
    %c0_i32 = arith.constant 0 : i32
    %c0_i32_0 = arith.constant 0 : i32
    %c0_i32_1 = arith.constant 0 : i32
    return %c0_i32, %c0_i32_0 : i32, i32
  }
  func.func @transform_5(%arg0: i32) -> (i32, i32) {
    %c0_i32 = arith.constant 0 : i32
    %c0_i32_0 = arith.constant 0 : i32
    %c0_i32_1 = arith.constant 0 : i32
    return %c0_i32, %c0_i32_0 : i32, i32
  }
  func.func @transform_6(%arg0: i32) -> (i32, i32) {
    %c0_i32 = arith.constant 0 : i32
    %c0_i32_0 = arith.constant 0 : i32
    return %arg0, %c0_i32 : i32, i32
  }
}

</mosaic_0001>

<bundles_post_ra>
// kernel: tpu_custom_call.1
= control target key start
LH: loop header
LB: loop body
LE: loop exit
PB: predicated region body
PF: predicated region fallthrough
CT: control target
= control target key end

     0   :  { %v833_v2 = vmov 0   ;;  %vm150_vm0 = vcmask 523264   ;;  %s1032_s0 = inlined_call_operand.vmem [shape: bf16[16,64], index: 0, kind: input, shape index: {}]   ;;  %s1033_s1 = inlined_call_operand.vmem [shape: bf16[64,512], index: 1, kind: input, shape index: {}]   ;;  %s1034_s2 = inlined_call_operand.vmem [shape: f32[1,512], index: 2, kind: input, shape index: {}]   ;;  %s1035_s3 = inlined_call_operand.vmem [shape: f32[1,512], index: 3, kind: input, shape index: {}]   ;;  %s1036_s4 = inlined_call_operand.vmem [shape: bf16[512,32], index: 4, kind: input, shape index: {}]   ;;  %s1037_s5 = inlined_call_operand.vmem [shape: f32[1,32], index: 5, kind: input, shape index: {}]   ;;  %s1038_s6 = inlined_call_operand.hbm [shape: f32[16,32], index: 6, kind: output, shape index: {}]  }
   0x1   :  { %v754_v0 = vld [vmem:[%s1033_s1 + $0x64] ss:$16 sps:$4 sm:$0xff]   ;;  %v756_v1 = vld [vmem:[%s1033_s1 + $0x6c] ss:$16 sps:$4 sm:$0xff]   ;;  %186 = vmatprep.mubr.bf16.mxu0 %v833_v2  ;;  %229 = vmatprep.mubr.bf16.mxu1 %v833_v2  ;;  %v758_v3 = vld [vmem:[%s1033_s1 + $0x60] ss:$16 sps:$4 sm:$0xff]  }
   0x2   :  { %162 = vmatprep.subr.bf16.mxu0 %v754_v0  ;;  %v759_v4 = vld [vmem:[%s1033_s1 + $0x68] ss:$16 sps:$4 sm:$0xff]   ;;  %205 = vmatprep.subr.bf16.mxu1 %v756_v1  ;;  %v760_v5 = vld [vmem:[%s1033_s1 + $0x44] ss:$16 sps:$4 sm:$0xff]   ;;  %v762_v6 = vld [vmem:[%s1033_s1 + $0x4c] ss:$16 sps:$4 sm:$0xff]  }
   0x3   :  { %163 = vmatpush1.bf16.msra.mxu0 %v758_v3  ;;  %206 = vmatpush1.bf16.msra.mxu1 %v759_v4  ;;  %v764_v7 = vld [vmem:[%s1033_s1 + $0x40] ss:$16 sps:$4 sm:$0xff]   ;;  %v765_v8 = vld [vmem:[%s1033_s1 + $0x48] ss:$16 sps:$4 sm:$0xff]   ;;  %v766_v9 = vld [vmem:[%s1033_s1 + $0x24] ss:$16 sps:$4 sm:$0xff]  }
   0x4   :  { %164 = vmatprep.subr.bf16.mxu0 %v760_v5  ;;  %207 = vmatprep.subr.bf16.mxu1 %v762_v6  ;;  %v768_v10 = vld [vmem:[%s1033_s1 + $0x2c] ss:$16 sps:$4 sm:$0xff]   ;;  %v770_v11 = vld [vmem:[%s1033_s1 + $0x20] ss:$16 sps:$4 sm:$0xff]   ;;  %v771_v12 = vld [vmem:[%s1033_s1 + $0x28] ss:$16 sps:$4 sm:$0xff]  }
   0x5   :  { %v772_v13 = vld [vmem:[%s1033_s1 + $0x4] ss:$16 sps:$4 sm:$0xff]   ;;  %v774_v14 = vld [vmem:[%s1033_s1 + $0xc] ss:$16 sps:$4 sm:$0xff]   ;;  %v776_v15 = vld [vmem:[%s1033_s1] ss:$16 sps:$4 sm:$0xff]  }
   0x6   :  { %v777_v16 = vld [vmem:[%s1033_s1 + $0x8] ss:$16 sps:$4 sm:$0xff]   ;;  %v778_v18 = vld [vmem:[%s1032_s0] sm:$0xff]   ;;  %v783_v22 = vld [vmem:[%s1036_s4 + $0x70] sm:$0xff]  }
   0x7   :  { %165 = vmatpush1.bf16.msra.mxu0 %v764_v7  ;;  %208 = vmatpush1.bf16.msra.mxu1 %v765_v8  ;;  %v779_v17 = vld [vmem:[%s1036_s4 + $0x78] sm:$0xff]   ;;  %v784_v23 = vld [vmem:[%s1036_s4 + $0xf0] sm:$0xff]   ;;  %v787_v26 = vld [vmem:[%s1036_s4 + $0x68] sm:$0xff]  }
   0x8   :  { %166 = vmatprep.subr.bf16.mxu0 %v766_v9  ;;  %209 = vmatprep.subr.bf16.mxu1 %v768_v10  ;;  %v780_v19 = vld [vmem:[%s1036_s4 + $0xf8] sm:$0xff]   ;;  %v785_v24 = vld [vmem:[%s1036_s4 + $0x30] sm:$0xff]   ;;  %v788_v27 = vld [vmem:[%s1036_s4 + $0xe8] sm:$0xff]  }
   0x9   :  { %v781_v20 = vld [vmem:[%s1036_s4 + $0x38] sm:$0xff]   ;;  %v786_v25 = vld [vmem:[%s1036_s4 + $0xb0] sm:$0xff]   ;;  %v789_v28 = vld [vmem:[%s1036_s4 + $0x28] sm:$0xff]  }
   0xa   :  { %v782_v21 = vld [vmem:[%s1036_s4 + $0xb8] sm:$0xff]   ;;  %v790_v29 = vld [vmem:[%s1036_s4 + $0xa8] sm:$0xff]   ;;  %v791_v30 = vld [vmem:[%s1036_s4 + $0x60] sm:$0xff]  }
   0xb   :  { %167 = vmatpush1.bf16.msra.mxu0 %v770_v11  ;;  %210 = vmatpush1.bf16.msra.mxu1 %v771_v12  ;;  %v792_v31 = vld [vmem:[%s1036_s4 + $0xe0] sm:$0xff]   ;;  %v795_v34 = vld [vmem:[%s1036_s4 + $0x58] sm:$0xff]  }
   0xc   :  { %168 = vmatprep.subr.bf16.mxu0 %v772_v13  ;;  %211 = vmatprep.subr.bf16.mxu1 %v774_v14  ;;  %v793_v32 = vld [vmem:[%s1036_s4 + $0x20] sm:$0xff]   ;;  %v796_v35 = vld [vmem:[%s1036_s4 + $0xd8] sm:$0xff]  }
   0xd   :  { %v794_v33 = vld [vmem:[%s1036_s4 + $0xa0] sm:$0xff]  }
   0xf   :  { %169 = vmatpush1.bf16.msra.mxu0 %v776_v15  ;;  %212 = vmatpush1.bf16.msra.mxu1 %v777_v16 }
  0x10   :  { %706 = vmatprep.subr.bf16.mxu0 %v779_v17  ;;  %728 = vmatprep.subr.bf16.mxu1 %v780_v19 }
  0x12   :  { %671 = vmatmul.mubr.msk.bf16.vlgmr.msra.gmra.mxu0 %vm150_vm0, %v778_v18  ;;  %672 = vmatmul.mubr.msk.bf16.vlgmr.msra.gmra.mxu1 %vm150_vm0, %v778_v18 }
  0x13   :  { %707 = vmatpush3.bf16.msra.mxu0 %v781_v20  ;;  %729 = vmatpush3.bf16.msra.mxu1 %v782_v21 }
  0x14   :  { %708 = vmatprep.subr.bf16.mxu0 %v783_v22  ;;  %730 = vmatprep.subr.bf16.mxu1 %v784_v23 }
  0x17   :  { %709 = vmatpush3.bf16.msra.mxu0 %v785_v24  ;;  %731 = vmatpush3.bf16.msra.mxu1 %v786_v25 }
  0x18   :  { %710 = vmatprep.subr.bf16.mxu0 %v787_v26  ;;  %732 = vmatprep.subr.bf16.mxu1 %v788_v27 }
  0x1b   :  { %711 = vmatpush3.bf16.msra.mxu0 %v789_v28  ;;  %733 = vmatpush3.bf16.msra.mxu1 %v790_v29 }
  0x1c   :  { %712 = vmatprep.subr.bf16.mxu0 %v791_v30  ;;  %734 = vmatprep.subr.bf16.mxu1 %v792_v31 }
  0x1f   :  { %713 = vmatpush3.bf16.msra.mxu0 %v793_v32  ;;  %735 = vmatpush3.bf16.msra.mxu1 %v794_v33 }
  0x20   :  { %714 = vmatprep.subr.bf16.mxu0 %v795_v34  ;;  %736 = vmatprep.subr.bf16.mxu1 %v796_v35 }
  0x21   :  { %11 = vsyncpa [#allocation3], 0  ;;  %v797_v36 = vld [vmem:[%s1036_s4 + $0x18] sm:$0xff]   ;;  %v799_v38 = vld [vmem:[%s1036_s4 + $0x50] sm:$0xff]   ;;  %v45_v50 = vlaneseq  ;;  %vm635_vm9 = vcmask 261120   ;;  %s834_s20 = smov [#allocation2]  }
  0x22   :  { %v798_v37 = vld [vmem:[%s1036_s4 + $0x98] sm:$0xff]   ;;  %v800_v39 = vld [vmem:[%s1036_s4 + $0xd0] sm:$0xff]   ;;  %v803_v42 = vld [vmem:[%s1036_s4 + $0x48] sm:$0xff]   ;;  %s643_s21 = sshll.u32 %s834_s20, 4  ;;  %s644_s21 = int_to_ptr.vmem [resolvable:$true] %s643_s21 }
  0x23   :  { %715 = vmatpush3.bf16.msra.mxu0 %v797_v36  ;;  %737 = vmatpush3.bf16.msra.mxu1 %v798_v37  ;;  %v801_v40 = vld [vmem:[%s1036_s4 + $0x10] sm:$0xff]   ;;  %v804_v43 = vld [vmem:[%s1036_s4 + $0xc8] sm:$0xff]   ;;  %v807_v46 = vld [vmem:[%s1036_s4 + $0x40] sm:$0xff]   ;;  %v46_v51 = vshrl.u32 %v45_v50, 7  ;;  %p816_p1 = scmp.lt.s32.totalorder %s644_s21, %s644_s21 }
  0x24   :  { %v802_v41 = vld [vmem:[%s1036_s4 + $0x90] sm:$0xff]   ;;  %716 = vmatprep.subr.bf16.mxu0 %v799_v38  ;;  %738 = vmatprep.subr.bf16.mxu1 %v800_v39  ;;  %v805_v44 = vld [vmem:[%s1036_s4 + $0x8] sm:$0xff]   ;;  %v808_v47 = vld [vmem:[%s1036_s4 + $0xc0] sm:$0xff]  }
  0x25   :  { %v806_v45 = vld [vmem:[%s1036_s4 + $0x88] sm:$0xff]   ;;  %v809_v48 = vld [vmem:[%s1036_s4] sm:$0xff]   ;;  %v47_v52 = vsub.s32 0, %v46_v51  ;;  %v51_v54 = vsub.s32 1, %v46_v51  ;;  %v59_v55 = vsub.s32 3, %v46_v51  ;;  %v55_v56 = vsub.s32 2, %v46_v51 }
  0x26   :  { %v810_v49 = vld [vmem:[%s1036_s4 + $0x80] sm:$0xff]  }
  0x27   :  { %717 = vmatpush3.bf16.msra.mxu0 %v801_v40  ;;  %739 = vmatpush3.bf16.msra.mxu1 %v802_v41  ;;  %v43_v53 = vld [vmem:[%s1034_s2] sm:$0xf] }
  0x28   :  { %718 = vmatprep.subr.bf16.mxu0 %v803_v42  ;;  %740 = vmatprep.subr.bf16.mxu1 %v804_v43  ;;  %v48_v57 = vrot.slane %v43_v53, %v47_v52  ;;  %v52_v60 = vrot.slane %v43_v53, %v51_v54  ;;  %v248_v61 = vld [vmem:[%s1035_s3] sm:$0xf]  ;;  %v60_v62 = vrot.slane %v43_v53, %v59_v55 }
  0x29   :  { %v56_v63 = vrot.slane %v43_v53, %v55_v56  ;;  %v257_v3 = vrot.slane %v248_v61, %v51_v54  ;;  %v253_v4 = vrot.slane %v248_v61, %v47_v52  ;;  %v265_v9 = vrot.slane %v248_v61, %v59_v55  ;;  %v673_v40 = vld [vmem:[%s1037_s5] ss:$0 sm:$0xff]  ;;  %s811_s5 = scalar_lea.vmem %s644_s21, 256 }
  0x2a   :  { %v261_v13 = vrot.slane %v248_v61, %v55_v56  ;;  %p812_p0 = scmp.ne.s32.totalorder %s644_s21, %s811_s5  ;;  %p817_p2 = scmp.lt.s32.totalorder %s811_s5, %s811_s5 }
  0x2b   :  { %719 = vmatpush3.bf16.msra.mxu0 %v805_v44  ;;  %741 = vmatpush3.bf16.msra.mxu1 %v806_v45 }
  0x2c   :  { %720 = vmatprep.subr.bf16.mxu0 %v807_v46  ;;  %742 = vmatprep.subr.bf16.mxu1 %v808_v47  ;;  %p818_p3 = por %p817_p2, %p816_p1 }
  0x2e   :  { %p819_p4 = pnand %p818_p3, %p812_p0 }
  0x2f   :  { %721 = vmatpush3.bf16.msra.mxu0 %v809_v48  ;;  %743 = vmatpush3.bf16.msra.mxu1 %v810_v49 }
  0xd2   :  { %v188_v58 = vpop.f32.mrf.mxu0  ;;  %v231_v59 = vpop.f32.mrf.mxu1 }
  0xd3   :  { %v189_v2 = vadd.f32 %v188_v58, %v48_v57  ;;  %v232_v12 = vadd.f32 %v231_v59, %v56_v63 }
  0xd4   :  { %v190_v0 = vpop.f32.mrf.mxu0  ;;  %v233_v1 = vpop.f32.mrf.mxu1 }
  0xd5   :  { %v191_v5 = vadd.f32 %v190_v0, %v52_v60  ;;  %v234_v8 = vadd.f32 %v233_v1, %v60_v62  ;;  %vm240_vm1 = vcmp.ge.f32.partialorder %v189_v2, 0.0  ;;  %v270_v21 = vmul.f32 %v253_v4, %v189_v2 }
  0xd6   :  { %v192_v6 = vpop.f32.mrf.mxu0  ;;  %v235_v7 = vpop.f32.mrf.mxu1  ;;  %v272_v23 = vmul.f32 %v261_v13, %v232_v12  ;;  %vm242_vm7 = vcmp.ge.f32.partialorder %v232_v12, 0.0 }
  0xd7   :  { %v193_v10 = vadd.f32 %v192_v6, %v48_v57  ;;  %v236_v11 = vadd.f32 %v235_v7, %v56_v63  ;;  %v271_v16 = vmul.f32 %v257_v3, %v191_v5  ;;  %vm241_vm3 = vcmp.ge.f32.partialorder %v191_v5, 0.0 }
  0xd8   :  { %v194_v14 = vpop.f32.mrf.mxu0  ;;  %v237_v15 = vpop.f32.mrf.mxu1  ;;  %v273_v22 = vmul.f32 %v265_v9, %v234_v8  ;;  %vm243_vm5 = vcmp.ge.f32.partialorder %v234_v8, 0.0  ;;  %v278_v30 = vsel %vm240_vm1, %v189_v2, %v270_v21  ;;  %v280_v34 = vsel %vm242_vm7, %v232_v12, %v272_v23 }
  0xd9   :  { %v274_v17 = vmul.f32 %v253_v4, %v193_v10  ;;  %vm244_vm2 = vcmp.ge.f32.partialorder %v193_v10, 0.0  ;;  %v276_v18 = vmul.f32 %v261_v13, %v236_v11  ;;  %v195_v19 = vadd.f32 %v194_v14, %v52_v60 }
  0xda   :  { %v238_v20 = vadd.f32 %v237_v15, %v60_v62  ;;  %vm246_vm4 = vcmp.ge.f32.partialorder %v236_v11, 0.0  ;;  %v279_v28 = vsel %vm241_vm3, %v191_v5, %v271_v16  ;;  %v281_v32 = vsel %vm243_vm5, %v234_v8, %v273_v22 }
  0xdb   :  { %vm245_vm6 = vcmp.ge.f32.partialorder %v195_v19, 0.0  ;;  %v275_v24 = vmul.f32 %v257_v3, %v195_v19  ;;  %v282_v25 = vsel %vm244_vm2, %v193_v10, %v274_v17  ;;  %v284_v27 = vsel %vm246_vm4, %v236_v11, %v276_v18 }
  0xdc   :  { %vm247_vm8 = vcmp.ge.f32.partialorder %v238_v20, 0.0  ;;  %v277_v26 = vmul.f32 %v265_v9, %v238_v20  ;;  %v286_v35 = vpack.c.bf16 %v282_v25, %v278_v30  ;;  %v288_v37 = vpack.c.bf16 %v284_v27, %v280_v34 }
  0xdd   :  { %v283_v29 = vsel %vm245_vm6, %v195_v19, %v275_v24 }
  0xde   :  { %v287_v31 = vpack.c.bf16 %v283_v29, %v279_v28  ;;  %v285_v33 = vsel %vm247_vm8, %v238_v20, %v277_v26 }
  0xdf   :  { %v289_v36 = vpack.c.bf16 %v285_v33, %v281_v32 }
  0xe0   :  { %585 = vmatprep.mubr.bf16.mxu0 %v287_v31 }
  0xe1   :  { %626 = vmatprep.mubr.bf16.mxu1 %v289_v36  ;;  %586 = vmatmul.mubr.bf16.vlgmr.msra.gmra.mxu0 %v286_v35 }
  0xe2   :  { %627 = vmatmul.mubr.bf16.vlgmr.msra.gmra.mxu1 %v288_v37 }
 0x1a1   :  { %v722_v38 = vpop.f32.mrf.mxu0 }
 0x1a2   :  { %v744_v39 = vpop.f32.mrf.mxu1 }
 0x1a3   :  { %v723_v41 = vpop.f32.mrf.mxu0 }
 0x1a4   :  { %v724_v42 = vadd.f32 %v723_v41, %v722_v38  ;;  %v745_v43 = vpop.f32.mrf.mxu1 }
 0x1a5   :  { %v725_v44 = vpop.f32.mrf.mxu0  ;;  %v746_v46 = vadd.f32 %v745_v43, %v744_v39 }
 0x1a6   :  { %v588_v45 = vadd.f32 %v724_v42, %v673_v40  ;;  %v747_v47 = vpop.f32.mrf.mxu1 }
 0x1a7   :  { %v726_v48 = vpop.f32.mrf.mxu0 }
 0x1a8   :  { %v629_v49 = vadd.f32 %v746_v46, %v588_v45  ;;  %v727_v50 = vadd.f32 %v726_v48, %v725_v44  ;;  %v748_v51 = vpop.f32.mrf.mxu1 }
 0x1a9   :  { %v749_v53 = vadd.f32 %v748_v51, %v747_v47 }
 0x1aa   :  { %636 = vst.msk [vmem:[#allocation2] sm:$0xff] %vm635_vm9, %v629_v49  ;;  %v591_v52 = vadd.f32 %v727_v50, %v673_v40 }
 0x1ac   :  { %v632_v54 = vadd.f32 %v749_v53, %v591_v52 }
 0x1ae   :  { %637 = vst.msk [vmem:[#allocation2 + $0x8] sm:$0xff] %vm635_vm9, %v632_v54 }
 0x1af   :  { %822 = shalt.err (!%p819_p4)
}
 0x1b0   :  { %s835_s22 = smov 128   ;;  %s836_s23 = smov 8  }
 0x1b1   :  { %649 = dma.vmem_to_hbm [thread:$0]  %s644_s21, 256, %s1038_s6, [#allocation3], %s835_s22, %s835_s22, %s836_s23  }
 0x1b2   :  { %831 = dma.done.wait [#allocation3], 256  }
 0x1b3   :  { %832 = vsyncadd [#allocation3], 4294967040 }
 0x1b4   :  { %653 = vsyncpa [#allocation3], 1 }

</bundles_post_ra>
